<compile_context>
chip_gen: v6e
topology: v6e:2x2x1
jax: 0.10.0
libtpu: 0.0.40
codegen_flags: <defaults>
</compile_context>

<pallas_src>
import jax
import jax.numpy as jnp
from jax.experimental import pallas as pl
from jax.experimental.pallas import tpu as pltpu

_LANES = 1024        # slab width: multiple of 128 lanes -> unmasked full-width stores
_MAX_TILE_ROWS = 512 # (512, 1024) f32 block = 2 MiB per buffer


def _prng_mul_kernel(seed_ref, x_ref, o_ref):
    """On-chip uniform [0,1) noise * x.  seed_ref is a scalar-prefetch arg."""
    # Mix the grid position into the seed so each tile draws a distinct stream.
    pltpu.prng_seed(seed_ref[0] + pl.program_id(0))
    bits = pltpu.bitcast(pltpu.prng_random_bits(x_ref.shape), jnp.uint32)
    # Mantissa trick: build f32 in [1, 2) from the top 23 random bits, then -1.0
    # -> uniform in [0, 1).  3 VALU ops + free bitcasts; kernel stays HBM-bound.
    mant = (bits >> jnp.uint32(9)) | jnp.uint32(0x3F800000)
    uniform = pltpu.bitcast(mant, jnp.float32) - jnp.float32(1.0)
    o_ref[...] = (uniform * x_ref[...]).astype(o_ref.dtype)


def _mul_kernel(x_ref, r_ref, o_ref):
    """Fallback: precomputed noise * x (portable, no TPU-only primitives)."""
    o_ref[...] = (r_ref[...] * x_ref[...]).astype(o_ref.dtype)


def _to_slab(flat_1d):
    """Pad a 1-D array to a lane-dense (rows, _LANES) slab."""
    n = flat_1d.size
    rows = (n + _LANES - 1) // _LANES
    pad = rows * _LANES - n
    slab = jnp.pad(flat_1d, (0, pad)).reshape(rows, _LANES)
    return slab, n, rows


def input_data_to_spiking_perceptron_layer(x, key):
    """JAX/Pallas equivalent of InputDataToSpikingPerceptronLayer.forward.

    x: any-rank array with leading batch dim (e.g. NCHW).
    key: jax PRNG key (fresh per forward, like torch.rand).
    Returns (batch, prod(rest)) = uniform[0,1) * x_flat, dtype == x.dtype.
    """
    b = x.shape[0]
    x_flat = x.reshape(b, -1)
    out_dtype = (x_flat.dtype if jnp.issubdtype(x_flat.dtype, jnp.floating)
                 else jnp.float32)

    slab, n, rows = _to_slab(x_flat.astype(out_dtype).reshape(-1))
    tile_rows = rows if rows <= _MAX_TILE_ROWS else _MAX_TILE_ROWS
    grid = (pl.cdiv(rows, tile_rows),)

    if jax.default_backend() == "tpu":
        # Primary path: on-chip hardware PRNG, seed passed via scalar prefetch.
        seed = jax.random.randint(key, (1,), 0, 2**31 - 1, dtype=jnp.int32)
        out_slab = pl.pallas_call(
            _prng_mul_kernel,
            out_shape=jax.ShapeDtypeStruct(slab.shape, out_dtype),
            grid_spec=pltpu.PrefetchScalarGridSpec(
                num_scalar_prefetch=1,
                grid=grid,
                in_specs=[pl.BlockSpec((tile_rows, _LANES),
                                       lambda i, seed_ref: (i, 0))],
                out_specs=pl.BlockSpec((tile_rows, _LANES),
                                       lambda i, seed_ref: (i, 0)),
            ),
            compiler_params=pltpu.CompilerParams(
                dimension_semantics=("parallel",),
                vmem_limit_bytes=32 << 20,
            ),
        )(seed, slab)
    else:
        # TODO(synk): pltpu.prng_seed/prng_random_bits have no lowering outside
        # real TPU / TPU-interpret mode; precompute noise and fuse the multiply.
        noise = jax.random.uniform(key, slab.shape, dtype=out_dtype)
        block = pl.BlockSpec((tile_rows, _LANES), lambda i: (i, 0))
        out_slab = pl.pallas_call(
            _mul_kernel,
            out_shape=jax.ShapeDtypeStruct(slab.shape, out_dtype),
            grid=grid,
            in_specs=[block, block],
            out_specs=block,
        )(slab, noise)

    return out_slab.reshape(-1)[:n].reshape(b, -1)


if __name__ == "__main__":
    key = jax.random.PRNGKey(0)
    kx, knoise = jax.random.split(key)
    # Small NCHW input consistent with a conv-style pipeline feeding this layer.
    x = jax.random.normal(kx, (2, 4, 16, 16), dtype=jnp.float32)

    y = input_data_to_spiking_perceptron_layer(x, knoise)
    y = jax.block_until_ready(y)

    # Sanity checks: output is (batch, flattened) and equals x_flat scaled
    # elementwise by a factor in [0, 1).
    assert y.shape == (2, 4 * 16 * 16)
    assert y.dtype == x.dtype
    x_flat = x.reshape(2, -1)
    sign_ok = jnp.where(
        jnp.abs(x_flat) > 0,
        (jnp.sign(y) == jnp.sign(x_flat)) | (y == 0),
        y == 0,
    )
    assert bool(jnp.all(sign_ok))
    assert bool(jnp.all(jnp.abs(y) <= jnp.abs(x_flat) + 1e-6))

    print("KERNEL_OK")
</pallas_src>

<mosaic_0001>
module attributes {stable_mosaic.version = 11 : i64} {
  func.func @_mul_kernel(%arg0: i32, %arg1: memref<2x1024xf32, #tpu.memory_space<vmem>>, %arg2: memref<2x1024xf32, #tpu.memory_space<vmem>>, %arg3: memref<2x1024xf32, #tpu.memory_space<vmem>>) attributes {dimension_semantics = [#tpu.dimension_semantics<arbitrary>], iteration_bounds = array<i64: 1>, scalar_prefetch = 0 : i64, scratch_operands = 0 : i64, tpu.core_type = #tpu.core_type<tc>, window_params = [{transform_indices = @transform_0, window_bounds = array<i64: 2, 1024>}, {transform_indices = @transform_1, window_bounds = array<i64: 2, 1024>}, {transform_indices = @transform_2, window_bounds = array<i64: 2, 1024>}]} {
    %c0 = arith.constant 0 : index
    %c0_0 = arith.constant 0 : index
    %0 = vector.load %arg2[%c0, %c0_0] : memref<2x1024xf32, #tpu.memory_space<vmem>>, vector<2x1024xf32>
    %c0_1 = arith.constant 0 : index
    %c0_2 = arith.constant 0 : index
    %1 = vector.load %arg1[%c0_1, %c0_2] : memref<2x1024xf32, #tpu.memory_space<vmem>>, vector<2x1024xf32>
    %2 = arith.mulf %0, %1 : vector<2x1024xf32>
    %c0_3 = arith.constant 0 : index
    %c0_4 = arith.constant 0 : index
    %3 = vector.load %arg3[%c0_3, %c0_4] : memref<2x1024xf32, #tpu.memory_space<vmem>>, vector<2x1024xf32>
    tpu.vector_store %arg3[%c0_3, %c0_4], %2 {strides = array<i32>} : memref<2x1024xf32, #tpu.memory_space<vmem>>, vector<2x1024xf32>,
    return
  }
  func.func @transform_0(%arg0: i32) -> (i32, i32) {
    %c0_i32 = arith.constant 0 : i32
    %c0_i32_0 = arith.constant 0 : i32
    return %arg0, %c0_i32 : i32, i32
  }
  func.func @transform_1(%arg0: i32) -> (i32, i32) {
    %c0_i32 = arith.constant 0 : i32
    %c0_i32_0 = arith.constant 0 : i32
    return %arg0, %c0_i32 : i32, i32
  }
  func.func @transform_2(%arg0: i32) -> (i32, i32) {
    %c0_i32 = arith.constant 0 : i32
    %c0_i32_0 = arith.constant 0 : i32
    return %arg0, %c0_i32 : i32, i32
  }
}

</mosaic_0001>

<bundles_post_ra>
// kernel: tpu_custom_call.1
= control target key start
LH: loop header
LB: loop body
LE: loop exit
PB: predicated region body
PF: predicated region fallthrough
CT: control target
= control target key end

     0   :  { %7 = vsyncpa [#allocation3], 0  ;;  %s156_s0 = inlined_call_operand.hbm [shape: f32[2,1024], index: 0, kind: input, shape index: {}]   ;;  %s157_s1 = inlined_call_operand.hbm [shape: f32[2,1024], index: 1, kind: input, shape index: {}]   ;;  %s158_s2 = inlined_call_operand.hbm [shape: f32[2,1024], index: 2, kind: output, shape index: {}]  }
   0x1   :  { %8 = vsyncpa [#allocation6], 0 }
   0x2   :  { %9 = vsyncpa [#allocation4], 0  ;;  %s129_s9 = smov [#allocation2]   ;;  %s130_s11 = smov [#allocation5]  }
   0x3   :  { %s16_s10 = sshll.u32 %s129_s9, 4  ;;  %s26_s12 = sshll.u32 %s130_s11, 4  ;;  %s17_s10 = int_to_ptr.vmem [resolvable:$true] %s16_s10  ;;  %s27_s12 = int_to_ptr.vmem [resolvable:$true] %s26_s12 }
   0x4   :  { %s71_s13 = scalar_lea.vmem %s17_s10, 256  ;;  %p76_p1 = scmp.lt.s32.totalorder %s17_s10, %s17_s10 }
   0x5   :  { %p72_p0 = scmp.ne.s32.totalorder %s17_s10, %s71_s13  ;;  %p77_p2 = scmp.lt.s32.totalorder %s71_s13, %s71_s13 }
   0x7   :  { %p78_p3 = por %p77_p2, %p76_p1 }
   0x9   :  { %p79_p4 = pnand %p78_p3, %p72_p0 }
   0xb   :  { %82 = shalt.err (!%p79_p4)
}
   0xc   :  { %19 = dma.hbm_to_vmem [thread:$0]  %s156_s0, 256, %s17_s10, [#allocation3]  }
   0xd   :  { %s91_s16 = scalar_lea.vmem %s27_s12, 256  ;;  %p96_p6 = scmp.lt.s32.totalorder %s27_s12, %s27_s12 }
   0xe   :  { %p92_p5 = scmp.ne.s32.totalorder %s27_s12, %s91_s16  ;;  %p97_p7 = scmp.lt.s32.totalorder %s91_s16, %s91_s16 }
  0x10   :  { %p98_p8 = por %p97_p7, %p96_p6 }
  0x12   :  { %p99_p9 = pnand %p98_p8, %p92_p5 }
  0x14   :  { %102 = shalt.err (!%p99_p9)
}
  0x15   :  { %29 = dma.hbm_to_vmem [thread:$0]  %s157_s1, 256, %s27_s12, [#allocation6]  }
  0x16   :  { %123 = dma.done.wait [#allocation3], 256  }
  0x17   :  { %124 = vsyncadd [#allocation3], 4294967040 }
  0x18   :  { %125 = dma.done.wait [#allocation6], 256  }
  0x19   :  { %126 = vsyncadd [#allocation6], 4294967040  ;;  %s131_s19 = smov [#allocation7]   ;;  %v36_v0 = vld [vmem:[#allocation5] sm:$0xff]  ;;  %v38_v1 = vld [vmem:[#allocation2] sm:$0xff] }
  0x1a   :  { %s50_s20 = sshll.u32 %s131_s19, 4  ;;  %v37_v2 = vld [vmem:[#allocation5 + $0x8] sm:$0xff]  ;;  %v40_v3 = vmul.f32 %v38_v1, %v36_v0  ;;  %v39_v4 = vld [vmem:[#allocation2 + $0x8] sm:$0xff]  ;;  %s51_s20 = int_to_ptr.vmem [resolvable:$true] %s50_s20 }
  0x1b   :  { %v41_v5 = vmul.f32 %v39_v4, %v37_v2  ;;  %s103_s0 = scalar_lea.vmem %s51_s20, 256  ;;  %p108_p11 = scmp.lt.s32.totalorder %s51_s20, %s51_s20 }
  0x1c   :  { %42 = vst [vmem:[#allocation7] sm:$0xff] %v40_v3  ;;  %p104_p10 = scmp.ne.s32.totalorder %s51_s20, %s103_s0  ;;  %p109_p12 = scmp.lt.s32.totalorder %s103_s0, %s103_s0 }
  0x1d   :  { %43 = vst [vmem:[#allocation7 + $0x8] sm:$0xff] %v41_v5 }
  0x1e   :  { %p110_p13 = por %p109_p12, %p108_p11 }
  0x20   :  { %p111_p0 = pnand %p110_p13, %p104_p10 }
  0x22   :  { %114 = shalt.err (!%p111_p0)
}
  0x23   :  { %53 = dma.vmem_to_hbm [thread:$0]  %s51_s20, 256, %s158_s2, [#allocation4]  }
  0x24   :  { %127 = dma.done.wait [#allocation4], 256  }
  0x25   :  { %128 = vsyncadd [#allocation4], 4294967040 }
  0x26   :  { %57 = vsyncpa [#allocation3], 1 }
  0x27   :  { %58 = vsyncpa [#allocation6], 1 }
  0x28   :  { %59 = vsyncpa [#allocation4], 1 }

</bundles_post_ra>
